<compile_context>
chip_gen: v7x
topology: tpu7x:2x2x1
jax: 0.10.0
libtpu: 0.0.40
codegen_flags: <defaults>
</compile_context>

<pallas_src>
import math

import jax
import jax.numpy as jnp
from jax.experimental import pallas as pl
from jax.experimental.pallas import tpu as pltpu


def _layer_scale_kernel(x_ref, gamma_ref, o_ref):
    # One (tile_rows, tile_d) tile: pure VPU broadcast-multiply.
    # gamma_ref is (1, tile_d) and broadcasts over the sublane (row) axis.
    o_ref[...] = x_ref[...] * gamma_ref[...]


def _choose_tile_d(d_eff, cap=4096):
    """Largest multiple-of-128 divisor of d_eff that is <= cap (d_eff % 128 == 0)."""
    if d_eff <= cap:
        return d_eff
    units = d_eff // 128
    for u in range(cap // 128, 0, -1):
        if units % u == 0:
            return u * 128
    return 128  # unreachable (u == 1 always divides), kept for safety


def _choose_tile_rows(r_eff, tile_d, itemsize):
    # Per-step VMEM footprint ~ 2x double-buffered input tile + 2x output tile
    # (+ tiny resident gamma block). Budget ~8 MiB so it fits every
    # generation's default scoped-VMEM limit with headroom.
    budget = 8 * 1024 * 1024
    bytes_per_row = tile_d * itemsize
    max_rows = max(8, budget // (4 * bytes_per_row))
    tile_rows = min(1024, max_rows)            # >=512-row tiles ~ HBM roofline
    r_pad8 = pl.cdiv(r_eff, 8) * 8
    tile_rows = min(tile_rows, r_pad8)         # don't exceed (padded) problem
    tile_rows = max(8, (tile_rows // 8) * 8)   # sublane multiple
    return tile_rows


def layer_scale(x, gamma, *, inplace=False):
    """y = x * gamma, gamma (D,) broadcast over the trailing dim of x (..., D)."""
    orig_shape = x.shape
    D = orig_shape[-1]
    assert gamma.shape == (D,), f"gamma shape {gamma.shape} != ({D},)"

    x2 = x.reshape(-1, D)
    R = x2.shape[0]
    itemsize = jnp.dtype(x.dtype).itemsize

    # Lane-dense repack: fold k consecutive rows into one so the last dim is a
    # multiple of 128 (k == 1 when D is already lane-aligned). The reshape is
    # contiguous -> free; only the (rare) tail pad costs a copy.
    k = 128 // math.gcd(D, 128)
    d_eff = k * D
    r_eff = pl.cdiv(R, k)

    tile_d = _choose_tile_d(d_eff)
    tile_rows = _choose_tile_rows(r_eff, tile_d, itemsize)

    # cdiv grid with explicit tail padding (only pads when needed).
    r_eff_pad = pl.cdiv(r_eff, tile_rows) * tile_rows
    rows_orig_pad = r_eff_pad * k
    if rows_orig_pad != R:
        x2 = jnp.pad(x2, ((0, rows_orig_pad - R), (0, 0)))
    x2 = x2.reshape(r_eff_pad, d_eff)

    gamma2 = jnp.tile(gamma.astype(x.dtype), k).reshape(1, d_eff)

    grid = (r_eff_pad // tile_rows, d_eff // tile_d)

    out = pl.pallas_call(
        _layer_scale_kernel,
        out_shape=jax.ShapeDtypeStruct((r_eff_pad, d_eff), x.dtype),
        grid_spec=pltpu.PrefetchScalarGridSpec(
            num_scalar_prefetch=0,
            grid=grid,
            in_specs=[
                pl.BlockSpec((tile_rows, tile_d), lambda i, j: (i, j)),
                # gamma block is constant across the row axis -> stays resident.
                pl.BlockSpec((1, tile_d), lambda i, j: (0, j)),
            ],
            out_specs=pl.BlockSpec((tile_rows, tile_d), lambda i, j: (i, j)),
        ),
        # "inplace" -> reuse x's buffer for the output (closest JAX analogue of
        # torch's mul_; JAX has no true in-place mutation).
        input_output_aliases={0: 0} if inplace else {},
        compiler_params=pltpu.CompilerParams(
            dimension_semantics=("parallel", "parallel"),
        ),
    )(x2, gamma2)

    out = out.reshape(rows_orig_pad, D)
    if rows_orig_pad != R:
        out = out[:R]
    return out.reshape(orig_shape)


class LayerScaleJax:
    """Mirror of the PyTorch LayerScale module; deterministic parameter init."""

    def __init__(self, dim, init_values=1e-05, inplace=False):
        # TODO(synk): torch's x.mul_(gamma) mutates x; JAX is functional, so
        # inplace is approximated via input_output_aliases (buffer reuse only).
        self.inplace = inplace
        self.gamma = init_values * jnp.ones((dim,), dtype=jnp.float32)

    def __call__(self, x):
        return layer_scale(x, self.gamma, inplace=self.inplace)


if __name__ == "__main__":
    # Case 1: shapes implied by the module (batch=2, seq=8, hidden=32).
    # Exercises the lane-folding path (D=32 -> k=4, d_eff=128).
    key = jax.random.PRNGKey(0)
    B, N, D = 2, 8, 32
    x = jax.random.normal(key, (B, N, D), dtype=jnp.float32)
    module = LayerScaleJax(dim=D, init_values=1e-05)
    y = jax.block_until_ready(module(x))
    y_ref = x * module.gamma
    assert y.shape == x.shape and y.dtype == x.dtype
    assert jnp.allclose(y, y_ref, atol=0, rtol=0)

    # Case 2: lane-aligned hidden dim, token count not a multiple of the tile
    # (exercises the cdiv grid + tail-padding path and the inplace alias).
    B2, N2, D2 = 2, 77, 256
    x_b = jax.random.normal(jax.random.PRNGKey(0), (B2, N2, D2), dtype=jnp.float32)
    module2 = LayerScaleJax(dim=D2, init_values=1e-05, inplace=True)
    y_b = jax.block_until_ready(module2(x_b))
    assert jnp.allclose(y_b, x_b * module2.gamma, atol=0, rtol=0)

    print("KERNEL_OK")
</pallas_src>

<mosaic_0001>
module attributes {stable_mosaic.version = 11 : i64} {
  func.func @_layer_scale_kernel(%arg0: i32, %arg1: i32, %arg2: memref<8x128xf32, #tpu.memory_space<vmem>>, %arg3: memref<1x128xf32, #tpu.memory_space<vmem>>, %arg4: memref<8x128xf32, #tpu.memory_space<vmem>>) attributes {dimension_semantics = [#tpu.dimension_semantics<parallel>, #tpu.dimension_semantics<parallel>], iteration_bounds = array<i64: 1, 1>, scalar_prefetch = 0 : i64, scratch_operands = 0 : i64, tpu.core_type = #tpu.core_type<tc>, window_params = [{transform_indices = @transform_0, window_bounds = array<i64: 8, 128>}, {transform_indices = @transform_1, window_bounds = array<i64: 1, 128>}, {transform_indices = @transform_2, window_bounds = array<i64: 8, 128>}]} {
    %c0 = arith.constant 0 : index
    %c0_0 = arith.constant 0 : index
    %0 = vector.load %arg2[%c0, %c0_0] : memref<8x128xf32, #tpu.memory_space<vmem>>, vector<8x128xf32>
    %c0_1 = arith.constant 0 : index
    %c0_2 = arith.constant 0 : index
    %1 = vector.load %arg3[%c0_1, %c0_2] : memref<1x128xf32, #tpu.memory_space<vmem>>, vector<1x128xf32>
    %2 = vector.broadcast %1 : vector<1x128xf32> to vector<8x128xf32>
    %3 = arith.mulf %0, %2 : vector<8x128xf32>
    %c0_3 = arith.constant 0 : index
    %c0_4 = arith.constant 0 : index
    %4 = vector.load %arg4[%c0_3, %c0_4] : memref<8x128xf32, #tpu.memory_space<vmem>>, vector<8x128xf32>
    tpu.vector_store %arg4[%c0_3, %c0_4], %3 {strides = array<i32>} : memref<8x128xf32, #tpu.memory_space<vmem>>, vector<8x128xf32>,
    return
  }
  func.func @transform_0(%arg0: i32, %arg1: i32) -> (i32, i32) {
    %c0_i32 = arith.constant 0 : i32
    return %arg0, %arg1 : i32, i32
  }
  func.func @transform_1(%arg0: i32, %arg1: i32) -> (i32, i32) {
    %c0_i32 = arith.constant 0 : i32
    %c0_i32_0 = arith.constant 0 : i32
    return %c0_i32, %arg1 : i32, i32
  }
  func.func @transform_2(%arg0: i32, %arg1: i32) -> (i32, i32) {
    %c0_i32 = arith.constant 0 : i32
    return %arg0, %arg1 : i32, i32
  }
}

</mosaic_0001>

<bundles_post_ra>
// kernel: tpu_custom_call.1
= control target key start
LH: loop header
LB: loop body
LE: loop exit
PB: predicated region body
PF: predicated region fallthrough
CT: control target
= control target key end

     0   :  { %7 = vsyncpa [#allocation3], 0  ;;  %s144_s0 = inlined_call_operand.hbm [shape: f32[8,128], index: 0, kind: input, shape index: {}]   ;;  %s145_s1 = inlined_call_operand.vmem [shape: f32[1,128], index: 1, kind: input, shape index: {}]   ;;  %s146_s2 = inlined_call_operand.hbm [shape: f32[8,128], index: 2, kind: output, shape index: {}]  }
   0x1   :  { %8 = vsyncpa [#allocation4], 0  ;;  %s100_s9 = smov [#allocation2]   ;;  %s52_s13 = scalar_lea.hbm %s144_s0, 128 }
   0x2   :  { %s15_s10 = sshll.u32 %s100_s9, 4  ;;  %p53_p0 = scmp.ne.s32.totalorder %s144_s0, %s52_s13  ;;  %s16_s10 = int_to_ptr.vmem [resolvable:$true] %s15_s10 }
   0x3   :  { %p56_p1 = scmp.lt.u32.totalorder %s52_s13, %s144_s0 }
   0x5   :  { %p58_p2 = pnand %p56_p1, %p53_p0 }
   0x7   :  { %61 = shalt.err (!%p58_p2)
}
   0x8   :  { %s62_s18 = scalar_lea.vmem %s16_s10, 128  ;;  %p67_p4 = scmp.lt.s32.totalorder %s16_s10, %s16_s10 }
   0x9   :  { %p63_p3 = scmp.ne.s32.totalorder %s16_s10, %s62_s18  ;;  %p68_p5 = scmp.lt.s32.totalorder %s62_s18, %s62_s18 }
   0xb   :  { %p69_p6 = por %p68_p5, %p67_p4 }
   0xd   :  { %p70_p7 = pnand %p69_p6, %p63_p3 }
   0xf   :  { %73 = shalt.err (!%p70_p7)
}
  0x10   :  { %18 = dma.hbm_to_vmem [thread:$0]  %s144_s0, 128, %s16_s10, [#allocation3]  }
  0x11   :  { %96 = dma.done.wait [#allocation3], 128  }
  0x12   :  { %97 = vsyncadd [#allocation3], 4294967168  ;;  %s101_s21 = smov [#allocation5]   ;;  %v24_v0 = vld [vmem:[#allocation2] sm:$0xff] }
  0x13   :  { %s40_s22 = sshll.u32 %s101_s21, 4  ;;  %v49_v1 = vld [vmem:[%s145_s1] ss:$0 sm:$0xff]  ;;  %s41_s22 = int_to_ptr.vmem [resolvable:$true] %s40_s22 }
  0x14   :  { %v32_v2 = vmul.f32 %v49_v1, %v24_v0  ;;  %s74_s25 = scalar_lea.vmem %s41_s22, 128  ;;  %p79_p9 = scmp.lt.s32.totalorder %s41_s22, %s41_s22 }
  0x15   :  { %p75_p8 = scmp.ne.s32.totalorder %s41_s22, %s74_s25  ;;  %p80_p10 = scmp.lt.s32.totalorder %s74_s25, %s74_s25 }
  0x16   :  { %33 = vst [vmem:[#allocation5] sm:$0xff] %v32_v2 }
  0x17   :  { %p81_p11 = por %p80_p10, %p79_p9 }
  0x19   :  { %p82_p12 = pnand %p81_p11, %p75_p8 }
  0x1b   :  { %85 = shalt.err (!%p82_p12)
}
  0x1c   :  { %s86_s27 = scalar_lea.hbm %s146_s2, 128 }
  0x1d   :  { %p87_p13 = scmp.ne.s32.totalorder %s146_s2, %s86_s27  ;;  %p90_p0 = scmp.lt.u32.totalorder %s86_s27, %s146_s2 }
  0x1f   :  { %p92_p1 = pnand %p90_p0, %p87_p13 }
  0x21   :  { %95 = shalt.err (!%p92_p1)
}
  0x22   :  { %43 = dma.vmem_to_hbm [thread:$0]  %s41_s22, 128, %s146_s2, [#allocation4]  }
  0x23   :  { %98 = dma.done.wait [#allocation4], 128  }
  0x24   :  { %99 = vsyncadd [#allocation4], 4294967168 }
  0x25   :  { %47 = vsyncpa [#allocation3], 1 }
  0x26   :  { %48 = vsyncpa [#allocation4], 1 }

</bundles_post_ra>
